<compile_context>
chip_gen: v5e
topology: v5e:2x2
jax: 0.10.0
libtpu: 0.0.40
codegen_flags: <defaults>
</compile_context>

<pallas_src>
import functools

import jax
import jax.numpy as jnp
from jax.experimental import pallas as pl
from jax.experimental.pallas import tpu as pltpu

NEG_SLOPE = 0.01      # nn.LeakyReLU() default
BN_EPS = 1e-5         # nn.BatchNorm2d default
# MXU input dtype. float32 keeps exact parity with the PyTorch module; set to
# jnp.bfloat16 (f32 accumulation is kept) for 2-4x MXU throughput at realistic
# channel counts (v5e/v6e/v7x MXUs are bf16-native).
MXU_DTYPE = jnp.float32


def convblock_kernel(x_ref, wband_ref, bias_ref, gamma_ref, beta_ref,
                     e_ref, et_ref, o_ref, xpad_ref, *,
                     n, h, w, cin, cout, k, pad):
    """Fused conv3x3(p=1) + bias + LeakyReLU + training-mode BatchNorm.

    Layout: activations are kept as (N*H, W*Cout); the channel axis is packed
    together with W on the 128-lane axis (W*Cout == 128 here), so all vector
    ops and the final HBM store are lane-dense.
    """
    f32 = jnp.float32

    # ---- H zero-border built in VMEM (no extra HBM pad pass). Rows [0, pad)
    # ---- and [pad+h, h+2*pad) stay zero; the W border is folded into wband.
    xpad_ref[...] = jnp.zeros((n, h + 2 * pad, w * cin), f32)
    xpad_ref[:, pad:pad + h, :] = x_ref[...]

    # ---- conv as `k` row-slab x banded-weight matmuls (lane-dense output) --
    acc = jnp.zeros((n * h, w * cout), f32)
    for ky in range(k):
        # (N, H, W*Cin) slab -> fold leading dims only (last dim unchanged).
        slab = xpad_ref[:, ky:ky + h, :].reshape(n * h, w * cin)
        acc = acc + jnp.dot(slab.astype(MXU_DTYPE),
                            wband_ref[ky].astype(MXU_DTYPE),
                            preferred_element_type=f32)
    acc = acc + bias_ref[...]                        # (1, W*Cout) broadcast
    y = jnp.where(acc > 0, acc, NEG_SLOPE * acc)     # LeakyReLU

    # ---- training-mode batch statistics (two-pass, centered variance) -----
    inv_cnt = 1.0 / float(n * h * w)
    # ET (W*Cout, Cout) folds the packed (w, c) lanes back to channels;
    # E (Cout, W*Cout) expands per-channel vectors to the packed lane layout.
    y_ch = jnp.dot(y, et_ref[...], preferred_element_type=f32)        # (N*H, Cout)
    mean_ch = jnp.sum(y_ch, axis=0, keepdims=True) * inv_cnt          # (1, Cout)
    mean_dense = jnp.dot(mean_ch, e_ref[...], preferred_element_type=f32)
    d = y - mean_dense
    d2_ch = jnp.dot(d * d, et_ref[...], preferred_element_type=f32)
    var_ch = jnp.sum(d2_ch, axis=0, keepdims=True) * inv_cnt          # biased var
    scale_ch = gamma_ref[...] * jax.lax.rsqrt(var_ch + BN_EPS)        # (1, Cout)
    scale_dense = jnp.dot(scale_ch, e_ref[...], preferred_element_type=f32)

    # ---- BN apply + lane-dense store ---------------------------------------
    o_ref[...] = (d * scale_dense + beta_ref[...]).astype(o_ref.dtype)


def _banded_weight(w_oihw, W, pad):
    """Build (K, W*Cin, W*Cout): wband[ky, wi*Cin+ci, wo*Cout+co] is the conv
    weight for output column wo reading input column wi at vertical tap ky.
    Taps that fall on the W zero-border have no entry (border folded in)."""
    Cout, Cin, K, _ = w_oihw.shape
    Wp = W + 2 * pad
    w_hwio = jnp.transpose(w_oihw, (2, 3, 1, 0)).astype(jnp.float32)  # (K,K,Cin,Cout)

    shp = (K, K, W, Cin, Cout)  # (ky, kx, w_out, ci, co)
    ky_i = jnp.arange(K)[:, None, None, None, None]
    kx_i = jnp.arange(K)[None, :, None, None, None]
    w_i = jnp.arange(W)[None, None, :, None, None]
    ci_i = jnp.arange(Cin)[None, None, None, :, None]
    co_i = jnp.arange(Cout)[None, None, None, None, :]

    rows = jnp.broadcast_to((w_i + kx_i) * Cin + ci_i, shp)   # padded input col
    cols = jnp.broadcast_to(w_i * Cout + co_i, shp)           # packed output col
    kys = jnp.broadcast_to(ky_i, shp)
    vals = jnp.broadcast_to(w_hwio[:, :, None, :, :], shp)

    wband_padded = jnp.zeros((K, Wp * Cin, W * Cout), jnp.float32)
    wband_padded = wband_padded.at[kys, rows, cols].set(vals)
    # Drop the rows that would multiply the W zero-border so the kernel can
    # contract the *unpadded* input row directly.
    return wband_padded[:, pad * Cin:(W + pad) * Cin, :]      # (K, W*Cin, W*Cout)


def convblock_forward(x_nchw, w_oihw, bias, gamma, beta):
    N, Cin, H, W = x_nchw.shape
    Cout, _, K, _ = w_oihw.shape
    pad = 1

    # ---- wrapper glue (tiny, layout only) ----------------------------------
    # NCHW -> NHWC, then fold (W, Cin) onto the lane axis (free row-major
    # reshape; only the transpose touches data — 4 KiB here).
    x3 = jnp.transpose(x_nchw, (0, 2, 3, 1)).astype(jnp.float32).reshape(N, H, W * Cin)

    wband = _banded_weight(w_oihw, W, pad)                               # (K, W*Cin, W*Cout)
    bias_dense = jnp.tile(bias.astype(jnp.float32), W).reshape(1, W * Cout)
    beta_dense = jnp.tile(beta.astype(jnp.float32), W).reshape(1, W * Cout)
    gamma_ch = gamma.astype(jnp.float32).reshape(1, Cout)
    # Channel expand / reduce maps for the packed (w, c) lane layout.
    E = jnp.tile(jnp.eye(Cout, dtype=jnp.float32), (1, W))               # (Cout, W*Cout)
    ET = E.T                                                             # (W*Cout, Cout)

    kern = functools.partial(convblock_kernel, n=N, h=H, w=W, cin=Cin,
                             cout=Cout, k=K, pad=pad)

    out_dense = pl.pallas_call(
        kern,
        out_shape=jax.ShapeDtypeStruct((N * H, W * Cout), jnp.float32),
        grid_spec=pltpu.PrefetchScalarGridSpec(
            num_scalar_prefetch=0,
            # Whole batch in ONE grid step: everything (<250 KiB) fits VMEM, so
            # a single step amortizes the ~0.35 us/step overhead and lets the
            # BN stats + apply fuse with the conv (no HBM round-trip of y).
            grid=(1,),
            in_specs=[
                pl.BlockSpec((N, H, W * Cin), lambda i: (0, 0, 0)),
                pl.BlockSpec((K, W * Cin, W * Cout), lambda i: (0, 0, 0)),
                pl.BlockSpec((1, W * Cout), lambda i: (0, 0)),
                pl.BlockSpec((1, Cout), lambda i: (0, 0)),
                pl.BlockSpec((1, W * Cout), lambda i: (0, 0)),
                pl.BlockSpec((Cout, W * Cout), lambda i: (0, 0)),
                pl.BlockSpec((W * Cout, Cout), lambda i: (0, 0)),
            ],
            out_specs=pl.BlockSpec((N * H, W * Cout), lambda i: (0, 0)),
            scratch_shapes=[pltpu.VMEM((N, H + 2 * pad, W * Cin), jnp.float32)],
        ),
        compiler_params=pltpu.CompilerParams(dimension_semantics=("arbitrary",)),
    )(x3, wband, bias_dense, gamma_ch, beta_dense, E, ET)

    # (N*H, W*Cout) -> NCHW: free reshape + one transpose back to PyTorch layout.
    return jnp.transpose(out_dense.reshape(N, H, W, Cout), (0, 3, 1, 2))


def _reference(x, w, b, gamma, beta):
    """Pure-JAX reference mirroring the PyTorch training-mode forward."""
    y = jax.lax.conv_general_dilated(
        x, w, window_strides=(1, 1), padding=((1, 1), (1, 1)),
        dimension_numbers=("NCHW", "OIHW", "NCHW"),
        precision=jax.lax.Precision.HIGHEST)
    y = y + b.reshape(1, -1, 1, 1)
    y = jnp.where(y > 0, y, NEG_SLOPE * y)
    mean = y.mean(axis=(0, 2, 3), keepdims=True)
    var = ((y - mean) ** 2).mean(axis=(0, 2, 3), keepdims=True)
    return (y - mean) / jnp.sqrt(var + BN_EPS) * gamma.reshape(1, -1, 1, 1) \
        + beta.reshape(1, -1, 1, 1)


if __name__ == "__main__":
    # Small shapes consistent with Convblock(input_c=4, output_c=8)
    N, Cin, Cout, H, W = 2, 4, 8, 16, 16

    key = jax.random.PRNGKey(0)
    kx, kw, kb, kg, kbeta = jax.random.split(key, 5)
    x = jax.random.normal(kx, (N, Cin, H, W), jnp.float32)
    w = jax.random.normal(kw, (Cout, Cin, 3, 3), jnp.float32) * 0.1   # Conv2d.weight
    b = jax.random.normal(kb, (Cout,), jnp.float32) * 0.1             # Conv2d.bias
    gamma = 1.0 + 0.1 * jax.random.normal(kg, (Cout,), jnp.float32)   # BatchNorm2d.weight
    beta = 0.1 * jax.random.normal(kbeta, (Cout,), jnp.float32)       # BatchNorm2d.bias

    out = jax.block_until_ready(convblock_forward(x, w, b, gamma, beta))

    ref = _reference(x, w, b, gamma, beta)
    assert out.shape == (N, Cout, H, W)
    assert jnp.allclose(out, ref, atol=2e-3, rtol=2e-3), "mismatch vs reference"

    print("KERNEL_OK")
</pallas_src>

<mosaic_0001>
module attributes {stable_mosaic.version = 11 : i64} {
  func.func @convblock_kernel(%arg0: i32, %arg1: memref<2x16x64xf32, #tpu.memory_space<vmem>>, %arg2: memref<3x64x128xf32, #tpu.memory_space<vmem>>, %arg3: memref<1x128xf32, #tpu.memory_space<vmem>>, %arg4: memref<1x8xf32, #tpu.memory_space<vmem>>, %arg5: memref<1x128xf32, #tpu.memory_space<vmem>>, %arg6: memref<8x128xf32, #tpu.memory_space<vmem>>, %arg7: memref<128x8xf32, #tpu.memory_space<vmem>>, %arg8: memref<32x128xf32, #tpu.memory_space<vmem>>, %arg9: memref<2x18x64xf32, #tpu.memory_space<vmem>>) attributes {dimension_semantics = [#tpu.dimension_semantics<arbitrary>], iteration_bounds = array<i64: 1>, scalar_prefetch = 0 : i64, scratch_operands = 1 : i64, tpu.core_type = #tpu.core_type<tc>, window_params = [{pipeline_mode = #tpu.pipeline_mode<synchronous>, transform_indices = @transform_0, window_bounds = array<i64: 2, 16, 64>}, {pipeline_mode = #tpu.pipeline_mode<synchronous>, transform_indices = @transform_1, window_bounds = array<i64: 3, 64, 128>}, {pipeline_mode = #tpu.pipeline_mode<synchronous>, transform_indices = @transform_2, window_bounds = array<i64: 1, 128>}, {pipeline_mode = #tpu.pipeline_mode<synchronous>, transform_indices = @transform_3, window_bounds = array<i64: 1, 8>}, {pipeline_mode = #tpu.pipeline_mode<synchronous>, transform_indices = @transform_4, window_bounds = array<i64: 1, 128>}, {pipeline_mode = #tpu.pipeline_mode<synchronous>, transform_indices = @transform_5, window_bounds = array<i64: 8, 128>}, {pipeline_mode = #tpu.pipeline_mode<synchronous>, transform_indices = @transform_6, window_bounds = array<i64: 128, 8>}, {pipeline_mode = #tpu.pipeline_mode<synchronous>, transform_indices = @transform_7, window_bounds = array<i64: 32, 128>}]} {
    %cst = arith.constant 0.000000e+00 : f32
    %0 = vector.broadcast %cst : f32 to vector<2x18x64xf32>
    %c0 = arith.constant 0 : index
    %c0_0 = arith.constant 0 : index
    %c0_1 = arith.constant 0 : index
    %1 = vector.load %arg9[%c0, %c0_0, %c0_1] : memref<2x18x64xf32, #tpu.memory_space<vmem>>, vector<2x18x64xf32>
    tpu.vector_store %arg9[%c0, %c0_0, %c0_1], %0 {strides = array<i32>} : memref<2x18x64xf32, #tpu.memory_space<vmem>>, vector<2x18x64xf32>,
    %c0_2 = arith.constant 0 : index
    %c0_3 = arith.constant 0 : index
    %c0_4 = arith.constant 0 : index
    %2 = vector.load %arg1[%c0_2, %c0_3, %c0_4] : memref<2x16x64xf32, #tpu.memory_space<vmem>>, vector<2x16x64xf32>
    %c0_5 = arith.constant 0 : index
    %c1 = arith.constant 1 : index
    %c0_6 = arith.constant 0 : index
    %3 = vector.load %arg9[%c0_5, %c1, %c0_6] : memref<2x18x64xf32, #tpu.memory_space<vmem>>, vector<2x16x64xf32>
    tpu.vector_store %arg9[%c0_5, %c1, %c0_6], %2 {strides = array<i32>} : memref<2x18x64xf32, #tpu.memory_space<vmem>>, vector<2x16x64xf32>,
    %cst_7 = arith.constant 0.000000e+00 : f32
    %4 = vector.broadcast %cst_7 : f32 to vector<32x128xf32>
    %c0_8 = arith.constant 0 : index
    %c0_9 = arith.constant 0 : index
    %c0_10 = arith.constant 0 : index
    %5 = vector.load %arg9[%c0_8, %c0_9, %c0_10] : memref<2x18x64xf32, #tpu.memory_space<vmem>>, vector<2x16x64xf32>
    %6 = vector.shape_cast %5 : vector<2x16x64xf32> to vector<32x64xf32>
    %c0_11 = arith.constant 0 : index
    %c0_12 = arith.constant 0 : index
    %c0_13 = arith.constant 0 : index
    %7 = vector.load %arg2[%c0_11, %c0_12, %c0_13] : memref<3x64x128xf32, #tpu.memory_space<vmem>>, vector<1x64x128xf32>
    %8 = vector.shape_cast %7 : vector<1x64x128xf32> to vector<64x128xf32>
    %cst_14 = arith.constant dense<0.000000e+00> : vector<32x128xf32>
    %9 = tpu.matmul %6, %8, %cst_14 {dimension_numbers = #tpu.dot_dimension_numbers<[1], [0], [0], [1], [0, 0, 1, 1], [], []>} : vector<32x64xf32>, vector<64x128xf32>, vector<32x128xf32> -> vector<32x128xf32>
    %10 = arith.addf %4, %9 : vector<32x128xf32>
    %c0_15 = arith.constant 0 : index
    %c1_16 = arith.constant 1 : index
    %c0_17 = arith.constant 0 : index
    %11 = vector.load %arg9[%c0_15, %c1_16, %c0_17] : memref<2x18x64xf32, #tpu.memory_space<vmem>>, vector<2x16x64xf32>
    %12 = vector.shape_cast %11 : vector<2x16x64xf32> to vector<32x64xf32>
    %c1_18 = arith.constant 1 : index
    %c0_19 = arith.constant 0 : index
    %c0_20 = arith.constant 0 : index
    %13 = vector.load %arg2[%c1_18, %c0_19, %c0_20] : memref<3x64x128xf32, #tpu.memory_space<vmem>>, vector<1x64x128xf32>
    %14 = vector.shape_cast %13 : vector<1x64x128xf32> to vector<64x128xf32>
    %cst_21 = arith.constant dense<0.000000e+00> : vector<32x128xf32>
    %15 = tpu.matmul %12, %14, %cst_21 {dimension_numbers = #tpu.dot_dimension_numbers<[1], [0], [0], [1], [0, 0, 1, 1], [], []>} : vector<32x64xf32>, vector<64x128xf32>, vector<32x128xf32> -> vector<32x128xf32>
    %16 = arith.addf %10, %15 : vector<32x128xf32>
    %c0_22 = arith.constant 0 : index
    %c2 = arith.constant 2 : index
    %c0_23 = arith.constant 0 : index
    %17 = vector.load %arg9[%c0_22, %c2, %c0_23] : memref<2x18x64xf32, #tpu.memory_space<vmem>>, vector<2x16x64xf32>
    %18 = vector.shape_cast %17 : vector<2x16x64xf32> to vector<32x64xf32>
    %c2_24 = arith.constant 2 : index
    %c0_25 = arith.constant 0 : index
    %c0_26 = arith.constant 0 : index
    %19 = vector.load %arg2[%c2_24, %c0_25, %c0_26] : memref<3x64x128xf32, #tpu.memory_space<vmem>>, vector<1x64x128xf32>
    %20 = vector.shape_cast %19 : vector<1x64x128xf32> to vector<64x128xf32>
    %cst_27 = arith.constant dense<0.000000e+00> : vector<32x128xf32>
    %21 = tpu.matmul %18, %20, %cst_27 {dimension_numbers = #tpu.dot_dimension_numbers<[1], [0], [0], [1], [0, 0, 1, 1], [], []>} : vector<32x64xf32>, vector<64x128xf32>, vector<32x128xf32> -> vector<32x128xf32>
    %22 = arith.addf %16, %21 : vector<32x128xf32>
    %c0_28 = arith.constant 0 : index
    %c0_29 = arith.constant 0 : index
    %23 = vector.load %arg3[%c0_28, %c0_29] : memref<1x128xf32, #tpu.memory_space<vmem>>, vector<1x128xf32>
    %24 = vector.broadcast %23 : vector<1x128xf32> to vector<32x128xf32>
    %25 = arith.addf %22, %24 : vector<32x128xf32>
    %cst_30 = arith.constant 0.000000e+00 : f32
    %26 = vector.broadcast %cst_30 : f32 to vector<32x128xf32>
    %27 = arith.cmpf ogt, %25, %26 : vector<32x128xf32>
    %cst_31 = arith.constant 0.00999999977 : f32
    %28 = vector.broadcast %cst_31 : f32 to vector<32x128xf32>
    %29 = arith.mulf %28, %25 : vector<32x128xf32>
    %30 = arith.select %27, %25, %29 : vector<32x128xi1>, vector<32x128xf32>
    %c0_32 = arith.constant 0 : index
    %c0_33 = arith.constant 0 : index
    %31 = vector.load %arg7[%c0_32, %c0_33] : memref<128x8xf32, #tpu.memory_space<vmem>>, vector<128x8xf32>
    %cst_34 = arith.constant dense<0.000000e+00> : vector<32x8xf32>
    %32 = tpu.matmul %30, %31, %cst_34 {dimension_numbers = #tpu.dot_dimension_numbers<[1], [0], [0], [1], [0, 0, 1, 1], [], []>} : vector<32x128xf32>, vector<128x8xf32>, vector<32x8xf32> -> vector<32x8xf32>
    %cst_35 = arith.constant dense<0.000000e+00> : vector<8xf32>
    %33 = vector.multi_reduction <add>, %32, %cst_35 [0] : vector<32x8xf32> to vector<8xf32>
    %34 = vector.shape_cast %33 : vector<8xf32> to vector<1x8xf32>
    %cst_36 = arith.constant 0.001953125 : f32
    %35 = vector.broadcast %cst_36 : f32 to vector<1x8xf32>
    %36 = arith.mulf %34, %35 : vector<1x8xf32>
    %c0_37 = arith.constant 0 : index
    %c0_38 = arith.constant 0 : index
    %37 = vector.load %arg6[%c0_37, %c0_38] : memref<8x128xf32, #tpu.memory_space<vmem>>, vector<8x128xf32>
    %cst_39 = arith.constant dense<0.000000e+00> : vector<1x128xf32>
    %38 = tpu.matmul %36, %37, %cst_39 {dimension_numbers = #tpu.dot_dimension_numbers<[1], [0], [0], [1], [0, 0, 1, 1], [], []>} : vector<1x8xf32>, vector<8x128xf32>, vector<1x128xf32> -> vector<1x128xf32>
    %39 = vector.broadcast %38 : vector<1x128xf32> to vector<32x128xf32>
    %40 = arith.subf %30, %39 : vector<32x128xf32>
    %41 = arith.mulf %40, %40 : vector<32x128xf32>
    %c0_40 = arith.constant 0 : index
    %c0_41 = arith.constant 0 : index
    %42 = vector.load %arg7[%c0_40, %c0_41] : memref<128x8xf32, #tpu.memory_space<vmem>>, vector<128x8xf32>
    %cst_42 = arith.constant dense<0.000000e+00> : vector<32x8xf32>
    %43 = tpu.matmul %41, %42, %cst_42 {dimension_numbers = #tpu.dot_dimension_numbers<[1], [0], [0], [1], [0, 0, 1, 1], [], []>} : vector<32x128xf32>, vector<128x8xf32>, vector<32x8xf32> -> vector<32x8xf32>
    %cst_43 = arith.constant dense<0.000000e+00> : vector<8xf32>
    %44 = vector.multi_reduction <add>, %43, %cst_43 [0] : vector<32x8xf32> to vector<8xf32>
    %45 = vector.shape_cast %44 : vector<8xf32> to vector<1x8xf32>
    %cst_44 = arith.constant 0.001953125 : f32
    %46 = vector.broadcast %cst_44 : f32 to vector<1x8xf32>
    %47 = arith.mulf %45, %46 : vector<1x8xf32>
    %c0_45 = arith.constant 0 : index
    %c0_46 = arith.constant 0 : index
    %48 = vector.load %arg4[%c0_45, %c0_46] : memref<1x8xf32, #tpu.memory_space<vmem>>, vector<1x8xf32>
    %cst_47 = arith.constant 9.99999974E-6 : f32
    %49 = vector.broadcast %cst_47 : f32 to vector<1x8xf32>
    %50 = arith.addf %47, %49 : vector<1x8xf32>
    %51 = math.rsqrt %50 : vector<1x8xf32>
    %52 = arith.mulf %48, %51 : vector<1x8xf32>
    %c0_48 = arith.constant 0 : index
    %c0_49 = arith.constant 0 : index
    %53 = vector.load %arg6[%c0_48, %c0_49] : memref<8x128xf32, #tpu.memory_space<vmem>>, vector<8x128xf32>
    %cst_50 = arith.constant dense<0.000000e+00> : vector<1x128xf32>
    %54 = tpu.matmul %52, %53, %cst_50 {dimension_numbers = #tpu.dot_dimension_numbers<[1], [0], [0], [1], [0, 0, 1, 1], [], []>} : vector<1x8xf32>, vector<8x128xf32>, vector<1x128xf32> -> vector<1x128xf32>
    %55 = vector.broadcast %54 : vector<1x128xf32> to vector<32x128xf32>
    %56 = arith.mulf %40, %55 : vector<32x128xf32>
    %c0_51 = arith.constant 0 : index
    %c0_52 = arith.constant 0 : index
    %57 = vector.load %arg5[%c0_51, %c0_52] : memref<1x128xf32, #tpu.memory_space<vmem>>, vector<1x128xf32>
    %58 = vector.broadcast %57 : vector<1x128xf32> to vector<32x128xf32>
    %59 = arith.addf %56, %58 : vector<32x128xf32>
    %c0_53 = arith.constant 0 : index
    %c0_54 = arith.constant 0 : index
    %60 = vector.load %arg8[%c0_53, %c0_54] : memref<32x128xf32, #tpu.memory_space<vmem>>, vector<32x128xf32>
    tpu.vector_store %arg8[%c0_53, %c0_54], %59 {strides = array<i32>} : memref<32x128xf32, #tpu.memory_space<vmem>>, vector<32x128xf32>,
    return
  }
  func.func @transform_0(%arg0: i32) -> (i32, i32, i32) {
    %c0_i32 = arith.constant 0 : i32
    %c0_i32_0 = arith.constant 0 : i32
    %c0_i32_1 = arith.constant 0 : i32
    %c0_i32_2 = arith.constant 0 : i32
    return %c0_i32, %c0_i32_0, %c0_i32_1 : i32, i32, i32
  }
  func.func @transform_1(%arg0: i32) -> (i32, i32, i32) {
    %c0_i32 = arith.constant 0 : i32
    %c0_i32_0 = arith.constant 0 : i32
    %c0_i32_1 = arith.constant 0 : i32
    %c0_i32_2 = arith.constant 0 : i32
    return %c0_i32, %c0_i32_0, %c0_i32_1 : i32, i32, i32
  }
  func.func @transform_2(%arg0: i32) -> (i32, i32) {
    %c0_i32 = arith.constant 0 : i32
    %c0_i32_0 = arith.constant 0 : i32
    %c0_i32_1 = arith.constant 0 : i32
    return %c0_i32, %c0_i32_0 : i32, i32
  }
  func.func @transform_3(%arg0: i32) -> (i32, i32) {
    %c0_i32 = arith.constant 0 : i32
    %c0_i32_0 = arith.constant 0 : i32
    %c0_i32_1 = arith.constant 0 : i32
    return %c0_i32, %c0_i32_0 : i32, i32
  }
  func.func @transform_4(%arg0: i32) -> (i32, i32) {
    %c0_i32 = arith.constant 0 : i32
    %c0_i32_0 = arith.constant 0 : i32
    %c0_i32_1 = arith.constant 0 : i32
    return %c0_i32, %c0_i32_0 : i32, i32
  }
  func.func @transform_5(%arg0: i32) -> (i32, i32) {
    %c0_i32 = arith.constant 0 : i32
    %c0_i32_0 = arith.constant 0 : i32
    %c0_i32_1 = arith.constant 0 : i32
    return %c0_i32, %c0_i32_0 : i32, i32
  }
  func.func @transform_6(%arg0: i32) -> (i32, i32) {
    %c0_i32 = arith.constant 0 : i32
    %c0_i32_0 = arith.constant 0 : i32
    %c0_i32_1 = arith.constant 0 : i32
    return %c0_i32, %c0_i32_0 : i32, i32
  }
  func.func @transform_7(%arg0: i32) -> (i32, i32) {
    %c0_i32 = arith.constant 0 : i32
    %c0_i32_0 = arith.constant 0 : i32
    %c0_i32_1 = arith.constant 0 : i32
    return %c0_i32, %c0_i32_0 : i32, i32
  }
}

</mosaic_0001>

<bundles_post_ra>
// kernel: tpu_custom_call.1
= control target key start
LH: loop header
LB: loop body
LE: loop exit
PB: predicated region body
PF: predicated region fallthrough
CT: control target
= control target key end

     0   :  { %12 = vsyncpa [#allocation4], 0  ;;  %s686_s0 = inlined_call_operand.vmem [shape: f32[2,16,64], index: 0, kind: input, shape index: {}]   ;;  %s687_s1 = inlined_call_operand.hbm [shape: f32[3,64,128], index: 1, kind: input, shape index: {}]   ;;  %s688_s2 = inlined_call_operand.vmem [shape: f32[1,128], index: 2, kind: input, shape index: {}]   ;;  %s689_s3 = inlined_call_operand.vmem [shape: f32[1,8], index: 3, kind: input, shape index: {}]   ;;  %s690_s4 = inlined_call_operand.vmem [shape: f32[1,128], index: 4, kind: input, shape index: {}]   ;;  %s691_s5 = inlined_call_operand.vmem [shape: f32[8,128], index: 5, kind: input, shape index: {}]   ;;  %s692_s6 = inlined_call_operand.vmem [shape: f32[128,8], index: 6, kind: input, shape index: {}]   ;;  %s693_s7 = inlined_call_operand.hbm [shape: f32[32,128], index: 7, kind: output, shape index: {}]  }
   0x1   :  { %13 = vsyncpa [#allocation5], 0  ;;  %s20_s26 = sshll.u32 %s687_s1, 4  ;;  %s527_s27 = smov [#allocation3]   ;;  %s21_s26 = int_to_ptr.hbm [resolvable:$true] %s20_s26 }
   0x2   :  { %s22_s28 = sshll.u32 %s527_s27, 4  ;;  %s528_s29 = smov 128   ;;  %s23_s28 = int_to_ptr.vmem [resolvable:$true] %s22_s28 }
   0x3   :  { %s529_s30 = smov 8  }
   0x4   :  { %28 = dma.hbm_to_vmem [thread:$0]  %s21_s26, 3072, %s23_s28, [#allocation4], %s528_s29, %s528_s29, %s529_s30  }
   0x5   :  { %523 = dma.done.wait [#allocation4], 3072  }
   0x6   :  { %524 = vsyncadd [#allocation4], 4294964224  ;;  %vm43_vm0 = vcmask 523264   ;;  %vm46_vm1 = vcmask 517120   ;;  %v530_v0 = vmov 0.0   ;;  %v178_v1 = vld [vmem:[#allocation3 + $0xb8] sm:$0xff] }
   0x7   :  { %44 = vst.msk [vmem:[#allocation2] sm:$0xff] %vm43_vm0, %v530_v0  ;;  %v177_v2 = vld [vmem:[#allocation3 + $0xb0] sm:$0xff]  ;;  %v83_v3 = vld [vmem:[#allocation3 + $0x78] sm:$0xff]  ;;  %199 = vmatpush.msra.mxu2 %v178_v1  ;;  %v176_v6 = vld [vmem:[#allocation3 + $0xa8] sm:$0xff]  ;;  %vm289_vm6 = vcmask 64512   ;;  %s439_s9 = sshll.u32 %s693_s7, 4  ;;  %s440_s9 = int_to_ptr.hbm [resolvable:$true] %s439_s9 }
   0x8   :  { %45 = vst.msk [vmem:[#allocation2 + $0x8] sm:$0xff] %vm43_vm0, %v530_v0  ;;  %104 = vmatpush.msra.mxu0 %v83_v3  ;;  %v70_v4 = vld [vmem:[#allocation3 + $0x38] sm:$0xff]  ;;  %v82_v5 = vld [vmem:[#allocation3 + $0x70] sm:$0xff]  ;;  %v81_v8 = vld [vmem:[#allocation3 + $0x68] sm:$0xff] }
   0x9   :  { %47 = vst.msk [vmem:[#allocation2 + $0x10] sm:$0x3] %vm46_vm1, %v530_v0  ;;  %145 = vmatpush.msra.mxu1 %v70_v4  ;;  %v69_v7 = vld [vmem:[#allocation3 + $0x30] sm:$0xff]  ;;  %200 = vmatpush.msra.mxu2 %v177_v2  ;;  %v68_v9 = vld [vmem:[#allocation3 + $0x28] sm:$0xff]  ;;  %v175_v10 = vld [vmem:[#allocation3 + $0xa0] sm:$0xff] }
   0xa   :  { %48 = vst.msk [vmem:[#allocation2 + $0x18] sm:$0xff] %vm43_vm0, %v530_v0  ;;  %105 = vmatpush.msra.mxu0 %v82_v5  ;;  %v80_v11 = vld [vmem:[#allocation3 + $0x60] sm:$0xff]  ;;  %v174_v13 = vld [vmem:[#allocation3 + $0x98] sm:$0xff]  ;;  %v51_v15 = vld [vmem:[%s686_s0] sm:$0xff] }
   0xb   :  { %49 = vst.msk [vmem:[#allocation2 + $0x20] sm:$0xff] %vm43_vm0, %v530_v0  ;;  %146 = vmatpush.msra.mxu1 %v69_v7  ;;  %201 = vmatpush.msra.mxu2 %v176_v6  ;;  %v67_v12 = vld [vmem:[#allocation3 + $0x20] sm:$0xff]  ;;  %v79_v14 = vld [vmem:[#allocation3 + $0x58] sm:$0xff]  ;;  %v173_v16 = vld [vmem:[#allocation3 + $0x90] sm:$0xff] }
   0xc   :  { %50 = vst.msk [vmem:[#allocation2 + $0x28] sm:$0x3] %vm46_vm1, %v530_v0  ;;  %106 = vmatpush.msra.mxu0 %v81_v8  ;;  %v66_v17 = vld [vmem:[#allocation3 + $0x18] sm:$0xff]  ;;  %v78_v19 = vld [vmem:[#allocation3 + $0x50] sm:$0xff]  ;;  %v53_v21 = vld [vmem:[%s686_s0 + $0x10] sm:$0xff] }
   0xd   :  { %147 = vmatpush.msra.mxu1 %v68_v9  ;;  %202 = vmatpush.msra.mxu2 %v175_v10  ;;  %v52_v18 = vld [vmem:[%s686_s0 + $0x8] sm:$0xff]  ;;  %55 = vst.msk [vmem:[#allocation2 + $0x1] sm:$0xff] %vm43_vm0, %v51_v15  ;;  %v65_v20 = vld [vmem:[#allocation3 + $0x10] sm:$0xff]  ;;  %v54_v22 = vld [vmem:[%s686_s0 + $0x18] sm:$0xff] }
   0xe   :  { %107 = vmatpush.msra.mxu0 %v80_v11  ;;  %56 = vst.msk [vmem:[#allocation2 + $0x9] sm:$0xff] %vm43_vm0, %v52_v18  ;;  %v259_v23 = vld [vmem:[%s692_s6 + $0x78] sm:$0xff]  ;;  %v258_v24 = vld [vmem:[%s692_s6 + $0x70] sm:$0xff]  ;;  %v257_v28 = vld [vmem:[%s692_s6 + $0x68] sm:$0xff] }
   0xf   :  { %148 = vmatpush.msra.mxu1 %v67_v12  ;;  %203 = vmatpush.msra.mxu2 %v174_v13  ;;  %57 = vst.msk [vmem:[#allocation2 + $0x19] sm:$0xff] %vm43_vm0, %v53_v21  ;;  %v172_v25 = vld [vmem:[#allocation3 + $0x88] sm:$0xff]  ;;  %v171_v29 = vld [vmem:[#allocation3 + $0x80] sm:$0xff]  ;;  %v256_v35 = vld [vmem:[%s692_s6 + $0x60] sm:$0xff] }
  0x10   :  { %108 = vmatpush.msra.mxu0 %v79_v14  ;;  %v77_v26 = vld [vmem:[#allocation3 + $0x48] sm:$0xff]  ;;  %58 = vst.msk [vmem:[#allocation2 + $0x21] sm:$0xff] %vm43_vm0, %v54_v22  ;;  %260 = vmatpush.msra.mxu3 %v259_v23  ;;  %v76_v30 = vld [vmem:[#allocation3 + $0x40] sm:$0xff]  ;;  %v253_v39 = vld [vmem:[%s692_s6 + $0x48] sm:$0xff] }
  0x11   :  { %149 = vmatpush.msra.mxu1 %v66_v17  ;;  %204 = vmatpush.msra.mxu2 %v173_v16  ;;  %v64_v27 = vld [vmem:[#allocation3 + $0x8] sm:$0xff]  ;;  %v63_v31 = vld [vmem:[#allocation3] sm:$0xff]  ;;  %v252_v42 = vld [vmem:[%s692_s6 + $0x40] sm:$0xff] }
  0x12   :  { %109 = vmatpush.msra.mxu0 %v78_v19  ;;  %261 = vmatpush.msra.mxu3 %v258_v24  ;;  %v255_v36 = vld [vmem:[%s692_s6 + $0x58] sm:$0xff]  ;;  %v254_v37 = vld [vmem:[%s692_s6 + $0x50] sm:$0xff]  ;;  %v249_v46 = vld [vmem:[%s692_s6 + $0x28] sm:$0xff] }
  0x13   :  { %150 = vmatpush.msra.mxu1 %v65_v20  ;;  %205 = vmatpush.msra.mxu2 %v172_v25  ;;  %v251_v43 = vld [vmem:[%s692_s6 + $0x38] sm:$0xff]  ;;  %v250_v44 = vld [vmem:[%s692_s6 + $0x30] sm:$0xff]  ;;  %v248_v52 = vld [vmem:[%s692_s6 + $0x20] sm:$0xff] }
  0x14   :  { %110 = vmatpush.msra.mxu0 %v77_v26  ;;  %v71_v32 = vld [vmem:[#allocation2 + $0x1] sm:$0xff]  ;;  %262 = vmatpush.msra.mxu3 %v257_v28  ;;  %v247_v53 = vld [vmem:[%s692_s6 + $0x18] sm:$0xff]  ;;  %v246_v54 = vld [vmem:[%s692_s6 + $0x10] sm:$0xff] }
  0x15   :  { %151 = vmatpush.msra.mxu1 %v64_v27  ;;  %v59_v33 = vld [vmem:[#allocation2] sm:$0xff]  ;;  %206 = vmatpush.msra.mxu2 %v171_v29  ;;  %v167_v38 = vld [vmem:[#allocation2 + $0xa] sm:$0xff] }
  0x16   :  { %v166_v34 = vld [vmem:[#allocation2 + $0x2] sm:$0xff]  ;;  %111 = vmatpush.msra.mxu0 %v76_v30  ;;  %263 = vmatpush.msra.mxu3 %v256_v35  ;;  %v73_v47 = vld [vmem:[#allocation2 + $0x19] sm:$0xff] }
  0x17   :  { %460 = vmatmul.msk.f32.vlgmr.msra.gmra.mxu2 %vm43_vm0, %v166_v34  ;;  %152 = vmatpush.msra.mxu1 %v63_v31  ;;  %v72_v40 = vld [vmem:[#allocation2 + $0x9] sm:$0xff]  ;;  %v168_v45 = vld [vmem:[#allocation2 + $0x1a] sm:$0xff] }
  0x18   :  { %452 = vmatmul.msk.f32.vlgmr.msra.gmra.mxu0 %vm43_vm0, %v71_v32  ;;  %456 = vmatmul.msk.f32.vlgmr.msra.gmra.mxu1 %vm43_vm0, %v59_v33  ;;  %v60_v41 = vld [vmem:[#allocation2 + $0x8] sm:$0xff]  ;;  %v61_v48 = vld [vmem:[#allocation2 + $0x18] sm:$0xff]  ;;  %v62_v51 = vld [vmem:[#allocation2 + $0x20] sm:$0xff] }
  0x19   :  { %337 = vmatpush.msrb.mxu1 %v259_v23  ;;  %264 = vmatpush.msra.mxu3 %v255_v36  ;;  %v169_v49 = vld [vmem:[#allocation2 + $0x22] sm:$0xff]  ;;  %v471_v60 = vld [vmem:[%s688_s2] ss:$0 sm:$0xff] }
  0x1a   :  { %v74_v50 = vld [vmem:[#allocation2 + $0x21] sm:$0xff] }
  0x1b   :  { %338 = vmatpush.msrb.mxu1 %v258_v24  ;;  %265 = vmatpush.msra.mxu3 %v254_v37  ;;  %v245_v55 = vld [vmem:[%s692_s6 + $0x8] sm:$0xff]  ;;  %v244_v56 = vld [vmem:[%s692_s6] sm:$0xff] }
  0x1c   :  { %v304_v26 = vld [vmem:[%s691_s5] sm:$0xff] }
  0x1d   :  { %339 = vmatpush.msrb.mxu1 %v257_v28  ;;  %266 = vmatpush.msra.mxu3 %v253_v39 }
  0x1e   :  { %323 = vmatpush.msrb.mxu0 %v304_v26  ;;  %411 = vmatpush.msrb.mxu2 %v304_v26 }
  0x1f   :  { %461 = vmatmul.msk.f32.gmra.mxu2 %vm43_vm0, %v167_v38  ;;  %267 = vmatpush.msra.mxu3 %v252_v42 }
  0x20   :  { %453 = vmatmul.msk.f32.gmra.mxu0 %vm43_vm0, %v72_v40  ;;  %457 = vmatmul.msk.f32.gmra.mxu1 %vm43_vm0, %v60_v41 }
  0x21   :  { %340 = vmatpush.msrb.mxu1 %v256_v35  ;;  %268 = vmatpush.msra.mxu3 %v251_v43 }
  0x23   :  { %341 = vmatpush.msrb.mxu1 %v255_v36  ;;  %269 = vmatpush.msra.mxu3 %v250_v44 }
  0x25   :  { %342 = vmatpush.msrb.mxu1 %v254_v37  ;;  %270 = vmatpush.msra.mxu3 %v249_v46 }
  0x27   :  { %462 = vmatmul.msk.f32.gmra.mxu2 %vm43_vm0, %v168_v45  ;;  %343 = vmatpush.msrb.mxu1 %v253_v39 }
  0x28   :  { %454 = vmatmul.msk.f32.gmra.mxu0 %vm43_vm0, %v73_v47  ;;  %458 = vmatmul.msk.f32.gmra.mxu1 %vm43_vm0, %v61_v48 }
  0x29   :  { %344 = vmatpush.msrb.mxu1 %v252_v42  ;;  %271 = vmatpush.msra.mxu3 %v248_v52 }
  0x2b   :  { %345 = vmatpush.msrb.mxu1 %v251_v43  ;;  %272 = vmatpush.msra.mxu3 %v247_v53 }
  0x2d   :  { %346 = vmatpush.msrb.mxu1 %v250_v44  ;;  %273 = vmatpush.msra.mxu3 %v246_v54 }
  0x2f   :  { %463 = vmatmul.msk.f32.gmra.mxu2 %vm43_vm0, %v169_v49  ;;  %347 = vmatpush.msrb.mxu1 %v249_v46 }
  0x30   :  { %455 = vmatmul.msk.f32.gmra.mxu0 %vm43_vm0, %v74_v50  ;;  %459 = vmatmul.msk.f32.gmra.mxu1 %vm43_vm0, %v62_v51 }
  0x31   :  { %348 = vmatpush.msrb.mxu1 %v248_v52  ;;  %274 = vmatpush.msra.mxu3 %v245_v55 }
  0x33   :  { %349 = vmatpush.msrb.mxu1 %v247_v53  ;;  %275 = vmatpush.msra.mxu3 %v244_v56 }
  0x35   :  { %350 = vmatpush.msrb.mxu1 %v246_v54 }
  0x37   :  { %351 = vmatpush.msrb.mxu1 %v245_v55 }
  0x39   :  { %352 = vmatpush.msrb.mxu1 %v244_v56 }
  0x95   :  { %v113_v57 = vpop.f32.mrf.mxu0  ;;  %v154_v58 = vpop.f32.mrf.mxu1 }
  0x96   :  { %v155_v59 = vadd.f32 %v154_v58, %v113_v57 }
  0x9a   :  { %v208_v61 = vpop.f32.mrf.mxu2 }
  0x9b   :  { %v220_v62 = vadd.f32 %v208_v61, %v155_v59 }
  0x9d   :  { %v228_v63 = vadd.f32 %v471_v60, %v220_v62  ;;  %v116_v0 = vpop.f32.mrf.mxu0  ;;  %v157_v1 = vpop.f32.mrf.mxu1 }
  0x9e   :  { %v158_v2 = vadd.f32 %v157_v1, %v116_v0 }
  0x9f   :  { %vm232_vm2 = vcmp.gt.f32.partialorder %v228_v63, 0.0  ;;  %v236_v3 = vmul.f32 0.01, %v228_v63 }
  0xa1   :  { %v240_v4 = vsel %vm232_vm2, %v228_v63, %v236_v3 }
  0xa2   :  { %v211_v5 = vpop.f32.mrf.mxu2  ;;  %276 = vmatmul.f32.vlgmr.msra.gmra.mxu3 %v240_v4 }
  0xa3   :  { %v221_v6 = vadd.f32 %v211_v5, %v158_v2 }
  0xa5   :  { %v229_v7 = vadd.f32 %v471_v60, %v221_v6  ;;  %v119_v8 = vpop.f32.mrf.mxu0  ;;  %v160_v9 = vpop.f32.mrf.mxu1 }
  0xa6   :  { %v161_v10 = vadd.f32 %v160_v9, %v119_v8 }
  0xa7   :  { %vm233_vm3 = vcmp.gt.f32.partialorder %v229_v7, 0.0  ;;  %v237_v11 = vmul.f32 0.01, %v229_v7 }
  0xa9   :  { %v241_v12 = vsel %vm233_vm3, %v229_v7, %v237_v11 }
  0xaa   :  { %v214_v13 = vpop.f32.mrf.mxu2  ;;  %279 = vmatmul.f32.gmra.mxu3 %v241_v12 }
  0xab   :  { %v222_v14 = vadd.f32 %v214_v13, %v161_v10 }
  0xad   :  { %v230_v15 = vadd.f32 %v471_v60, %v222_v14  ;;  %v122_v16 = vpop.f32.mrf.mxu0  ;;  %v163_v17 = vpop.f32.mrf.mxu1 }
  0xae   :  { %v164_v18 = vadd.f32 %v163_v17, %v122_v16 }
  0xaf   :  { %vm234_vm4 = vcmp.gt.f32.partialorder %v230_v15, 0.0  ;;  %v238_v19 = vmul.f32 0.01, %v230_v15 }
  0xb1   :  { %v242_v20 = vsel %vm234_vm4, %v230_v15, %v238_v19  ;;  %v380_v15 = vld [vmem:[%s689_s3] sm:$0x1]  ;;  %s531_s3 = smov [#allocation6]  }
  0xb2   :  { %v217_v21 = vpop.f32.mrf.mxu2  ;;  %282 = vmatmul.f32.gmra.mxu3 %v242_v20  ;;  %s437_s28 = sshll.u32 %s531_s3, 4  ;;  %s438_s28 = int_to_ptr.vmem [resolvable:$true] %s437_s28 }
  0xb3   :  { %v223_v22 = vadd.f32 %v217_v21, %v164_v18  ;;  %v472_v21 = vld [vmem:[%s690_s4] ss:$0 sm:$0xff] }
  0xb5   :  { %v231_v23 = vadd.f32 %v471_v60, %v223_v22 }
  0xb7   :  { %vm235_vm5 = vcmp.gt.f32.partialorder %v231_v23, 0.0  ;;  %v239_v24 = vmul.f32 0.01, %v231_v23 }
  0xb9   :  { %v243_v25 = vsel %vm235_vm5, %v231_v23, %v239_v24 }
  0xba   :  { %285 = vmatmul.f32.gmra.mxu3 %v243_v25 }
 0x125   :  { %v277_v27 = vpop.f32.mrf.mxu3 }
 0x126   :  { %v290_v31 = vsel %vm289_vm6, %v277_v27, 0.0 }
 0x12d   :  { %v280_v28 = vpop.f32.mrf.mxu3 }
 0x12e   :  { %v291_v30 = vsel %vm289_vm6, %v280_v28, 0.0 }
 0x12f   :  { %v292_v33 = vadd.f32 %v291_v30, %v290_v31 }
 0x135   :  { %v283_v29 = vpop.f32.mrf.mxu3 }
 0x136   :  { %v293_v32 = vsel %vm289_vm6, %v283_v29, 0.0 }
 0x137   :  { %v294_v34 = vadd.f32 %v293_v32, %v292_v33 }
 0x13d   :  { %v286_v35 = vpop.f32.mrf.mxu3 }
 0x13e   :  { %v295_v36 = vsel %vm289_vm6, %v286_v35, 0.0 }
 0x13f   :  { %v296_v37 = vadd.f32 %v295_v36, %v294_v34 }
 0x141   :  { %v297_v38 = vrot.slane %v296_v37, 4 }
 0x143   :  { %v298_v39 = vadd.f32 %v297_v38, %v296_v37 }
 0x145   :  { %v299_v40 = vrot.slane %v298_v39, 2 }
 0x147   :  { %v300_v41 = vadd.f32 %v299_v40, %v298_v39 }
 0x149   :  { %v301_v42 = vrot.slane %v300_v41, 1 }
 0x14b   :  { %v302_v43 = vadd.f32 %v301_v42, %v300_v41 }
 0x14d   :  { %v303_v44 = vmul.f32 0.001953125, %v302_v43 }
 0x14f   :  { %464 = vmatmul.msk.f32.vlgmr.msrb.gmra.mxu0 %vm289_vm6, %v303_v44 }
 0x1cc   :  { %v325_v45 = vpop.f32.mrf.mxu0 }
 0x1cd   :  { %v328_v46 = vperm.slane %v325_v45, 0 }
 0x1cf   :  { %v329_v47 = vsub.f32 %v240_v4, %v328_v46  ;;  %v330_v49 = vsub.f32 %v241_v12, %v328_v46  ;;  %v331_v51 = vsub.f32 %v242_v20, %v328_v46  ;;  %v332_v53 = vsub.f32 %v243_v25, %v328_v46 }
 0x1d1   :  { %v333_v48 = vmul.f32 %v329_v47, %v329_v47  ;;  %v334_v50 = vmul.f32 %v330_v49, %v330_v49  ;;  %v335_v52 = vmul.f32 %v331_v51, %v331_v51  ;;  %v336_v54 = vmul.f32 %v332_v53, %v332_v53 }
 0x1d3   :  { %353 = vmatmul.f32.vlgmr.msrb.gmra.mxu1 %v333_v48 }
 0x1db   :  { %356 = vmatmul.f32.gmra.mxu1 %v334_v50 }
 0x1e3   :  { %359 = vmatmul.f32.gmra.mxu1 %v335_v52 }
 0x1eb   :  { %362 = vmatmul.f32.gmra.mxu1 %v336_v54 }
 0x250   :  { %v354_v55 = vpop.f32.mrf.mxu1 }
 0x251   :  { %v366_v59 = vsel %vm289_vm6, %v354_v55, 0.0 }
 0x258   :  { %v357_v56 = vpop.f32.mrf.mxu1 }
 0x259   :  { %v367_v58 = vsel %vm289_vm6, %v357_v56, 0.0 }
 0x25a   :  { %v368_v61 = vadd.f32 %v367_v58, %v366_v59 }
 0x260   :  { %v360_v57 = vpop.f32.mrf.mxu1 }
 0x261   :  { %v369_v60 = vsel %vm289_vm6, %v360_v57, 0.0 }
 0x262   :  { %v370_v62 = vadd.f32 %v369_v60, %v368_v61 }
 0x268   :  { %v363_v63 = vpop.f32.mrf.mxu1 }
 0x269   :  { %v371_v0 = vsel %vm289_vm6, %v363_v63, 0.0 }
 0x26a   :  { %v372_v1 = vadd.f32 %v371_v0, %v370_v62 }
 0x26c   :  { %v373_v2 = vrot.slane %v372_v1, 4 }
 0x26e   :  { %v374_v3 = vadd.f32 %v373_v2, %v372_v1 }
 0x270   :  { %v375_v4 = vrot.slane %v374_v3, 2 }
 0x272   :  { %v376_v5 = vadd.f32 %v375_v4, %v374_v3 }
 0x274   :  { %v377_v6 = vrot.slane %v376_v5, 1 }
 0x276   :  { %v378_v7 = vadd.f32 %v377_v6, %v376_v5 }
 0x278   :  { %v379_v8 = vmul.f32 0.001953125, %v378_v7 }
 0x27a   :  { %v381_v9 = vadd.f32 1e-05, %v379_v8 }
 0x27c   :  { %473 = vrsqrt.f32 %v381_v9  ;;  %vm388_vm8 = vweird.f32 %v381_v9 }
 0x282   :  { %v474_v10 = vpop.eup %473 }
 0x283   :  { %v383_v11 = vmul.f32 %v474_v10, %v381_v9  ;;  %vm389_vm7 = vweird.f32 %v474_v10 }
 0x284   :  { %vm390_vm9 = vmor %vm388_vm8, %vm389_vm7 }
 0x285   :  { %v384_v12 = vmul.f32 %v474_v10, %v383_v11 }
 0x287   :  { %v385_v13 = vmul.f32 0.5, %v384_v12 }
 0x289   :  { %v386_v14 = vsub.f32 1.5, %v385_v13 }
 0x28b   :  { %v387_v16 = vmul.f32 %v474_v10, %v386_v14 }
 0x28d   :  { %v391_v17 = vsel %vm390_vm9, %v474_v10, %v387_v16 }
 0x28e   :  { %v392_v18 = vmul.f32 %v391_v17, %v380_v15 }
 0x290   :  { %465 = vmatmul.msk.f32.vlgmr.msrb.gmra.mxu2 %vm289_vm6, %v392_v18 }
 0x313   :  { %v413_v19 = vpop.f32.mrf.mxu2 }
 0x314   :  { %v416_v20 = vperm.slane %v413_v19, 0 }
 0x316   :  { %v417_v22 = vmul.f32 %v416_v20, %v329_v47  ;;  %v418_v23 = vmul.f32 %v416_v20, %v330_v49  ;;  %v419_v24 = vmul.f32 %v416_v20, %v331_v51  ;;  %v420_v25 = vmul.f32 %v416_v20, %v332_v53 }
 0x318   :  { %v425_v26 = vadd.f32 %v472_v21, %v417_v22  ;;  %v426_v27 = vadd.f32 %v472_v21, %v418_v23  ;;  %v427_v28 = vadd.f32 %v472_v21, %v419_v24  ;;  %v428_v29 = vadd.f32 %v472_v21, %v420_v25 }
 0x31a   :  { %429 = vst [vmem:[#allocation6] sm:$0xff] %v425_v26 }
 0x31b   :  { %430 = vst [vmem:[#allocation6 + $0x8] sm:$0xff] %v426_v27 }
 0x31c   :  { %431 = vst [vmem:[#allocation6 + $0x10] sm:$0xff] %v427_v28 }
 0x31d   :  { %432 = vst [vmem:[#allocation6 + $0x18] sm:$0xff] %v428_v29 }
 0x31e   :  { %445 = dma.vmem_to_hbm [thread:$0]  %s438_s28, 512, %s440_s9, [#allocation5], %s528_s29, %s528_s29, %s529_s30  }
 0x31f   :  { %525 = dma.done.wait [#allocation5], 512  }
 0x320   :  { %526 = vsyncadd [#allocation5], 4294966784 }
 0x321   :  { %450 = vsyncpa [#allocation4], 1 }
 0x322   :  { %451 = vsyncpa [#allocation5], 1 }

</bundles_post_ra>
